<compile_context>
chip_gen: v6e
topology: v6e:2x2x1
jax: 0.10.0
libtpu: 0.0.40
codegen_flags: <defaults>
</compile_context>

<pallas_src>
import functools

import jax
import jax.numpy as jnp
from jax.experimental import pallas as pl
from jax.experimental.pallas import tpu as pltpu


def _round_up(x, m):
    return ((x + m - 1) // m) * m


def _vmem_budget_bytes():
    """Per-generation VMEM budget: 75% of physical capacity (compiler headroom).

    Falls back to 48 MiB (75% of v7x's 64 MiB per-TensorCore VMEM), which is a
    safe budget on every generation.
    """
    cap = 64 << 20
    try:
        info = pltpu.get_tpu_info()
        cap = int(getattr(info, "vmem_capacity_bytes", cap))
    except Exception:
        pass
    return max(32 << 20, int(cap * 0.75))


def _inner_tile_candidates(inner):
    """Divisors of `inner` that are multiples of 128, descending (inner first)."""
    assert inner % 128 == 0
    base = inner // 128
    return [k * 128 for k in range(base, 0, -1) if base % k == 0]


def _vmem_estimate(tm, ti, D, dout_p, isz_x, isz_w, isz_out, single_step):
    """Rough VMEM bytes for one pipelined grid step (double-buffered inputs)."""
    est = (2 * tm * D * isz_x                 # x tile
           + 2 * 2 * D * ti * isz_w           # W1 value + gate slabs
           + 2 * 2 * ti * 4                   # b1 halves
           + 2 * ti * dout_p * isz_w          # W2 slab
           + 2 * dout_p * 4                   # b2
           + 2 * tm * dout_p * isz_out        # output tile
           + 3 * tm * ti * 4)                 # a / g / y f32 intermediates
    if not single_step:
        est += tm * dout_p * 4                # f32 accumulator scratch
    return est


def _ff_glu_kernel_single(x_ref, w1a_ref, w1b_ref, b1a_ref, b1b_ref, w2_ref,
                          b2_ref, o_ref, *, cdt):
    """ti == inner: whole hidden dim in one step, direct write, no scratch."""
    x = x_ref[...].astype(cdt)
    a = jnp.dot(x, w1a_ref[...], preferred_element_type=jnp.float32)
    a = a + b1a_ref[...].astype(jnp.float32)
    g = jnp.dot(x, w1b_ref[...], preferred_element_type=jnp.float32)
    g = g + b1b_ref[...].astype(jnp.float32)
    y = a * (g * jax.nn.sigmoid(g))          # GLU with SiLU gate, in f32
    out = jnp.dot(y.astype(cdt), w2_ref[...], preferred_element_type=jnp.float32)
    o_ref[...] = (out + b2_ref[...].astype(jnp.float32)).astype(o_ref.dtype)


def _ff_glu_kernel_tiled(x_ref, w1a_ref, w1b_ref, b1a_ref, b1b_ref, w2_ref,
                         b2_ref, o_ref, acc_ref, *, cdt):
    """Inner dim tiled: accumulate partial output projections in f32 scratch."""
    j = pl.program_id(1)

    @pl.when(j == 0)
    def _():
        # Initialize with the output bias so there is no epilogue add.
        acc_ref[...] = jnp.broadcast_to(b2_ref[...].astype(jnp.float32),
                                        acc_ref.shape)

    x = x_ref[...].astype(cdt)
    a = jnp.dot(x, w1a_ref[...], preferred_element_type=jnp.float32)
    a = a + b1a_ref[...].astype(jnp.float32)
    g = jnp.dot(x, w1b_ref[...], preferred_element_type=jnp.float32)
    g = g + b1b_ref[...].astype(jnp.float32)
    y = a * (g * jax.nn.sigmoid(g))
    acc_ref[...] += jnp.dot(y.astype(cdt), w2_ref[...],
                            preferred_element_type=jnp.float32)

    @pl.when(j == pl.num_programs(1) - 1)
    def _():
        o_ref[...] = acc_ref[...].astype(o_ref.dtype)


def feedforward_glu(x, w1, b1, w2, b2, *, compute_dtype=jnp.bfloat16,
                    max_tm=512):
    """GLU FeedForward forward: out = (a * silu(g)) @ W2 + b2, [a|g] = x @ W1 + b1.

    x: (B, N, D); w1: (D, 2*inner); b1: (2*inner,); w2: (inner, Dout); b2: (Dout,).
    compute_dtype: MXU operand dtype (bf16 default; accumulation and gating are
    f32). Pass weights pre-cast to compute_dtype to avoid any per-call weight
    copy in HBM.
    """
    B, N, D = x.shape
    two_inner = w1.shape[1]
    inner = two_inner // 2
    Dout = w2.shape[1]
    out_dtype = x.dtype
    cdt = jnp.dtype(compute_dtype) if compute_dtype is not None else jnp.dtype(x.dtype)

    # Weights: cast only if needed (callers should pre-cast to compute_dtype).
    w1c = w1 if w1.dtype == cdt else w1.astype(cdt)
    w2c = w2 if w2.dtype == cdt else w2.astype(cdt)

    # Lane-dense output: pad Dout to a multiple of 128 (full-width vst, no
    # masked stores in the accumulator RMW / write-back). Sliced off afterwards.
    dout_p = _round_up(Dout, 128)
    if dout_p != Dout:
        w2c = jnp.pad(w2c, ((0, 0), (0, dout_p - Dout)))
        b2p = jnp.pad(b2, (0, dout_p - Dout))
    else:
        b2p = b2
    b2_2d = b2p.reshape(1, dout_p)

    # W1 value/gate halves without HBM copies: pass the same array twice and
    # offset the gate BlockSpec index_map by inner//ti block-columns.
    if inner % 128 == 0:
        inner_eff = inner
        w1a, w1b = w1c, w1c
        b1_2d = b1.reshape(1, two_inner)
        b1a, b1b = b1_2d, b1_2d
        split = False
    else:
        # Awkward inner: materialize zero-padded halves (rare) to keep tiling
        # lane-aligned instead of forcing a possibly VMEM-blowing full slab.
        inner_eff = _round_up(inner, 128)
        padi = inner_eff - inner
        w1a = jnp.pad(w1c[:, :inner], ((0, 0), (0, padi)))
        w1b = jnp.pad(w1c[:, inner:], ((0, 0), (0, padi)))
        b1a = jnp.pad(b1[:inner], (0, padi)).reshape(1, inner_eff)
        b1b = jnp.pad(b1[inner:], (0, padi)).reshape(1, inner_eff)
        w2c = jnp.pad(w2c, ((0, padi), (0, 0)))
        split = True

    # ------------------------------------------------------------------ tiles
    M = B * N
    isz_x = jnp.dtype(x.dtype).itemsize
    isz_w = jnp.dtype(cdt).itemsize
    isz_out = jnp.dtype(out_dtype).itemsize
    budget = _vmem_budget_bytes()

    m_cap = _round_up(M, 8)
    tm_opts = [t for t in (max_tm, 512, 256, 128, 64, 32, 16, 8)
               if t <= m_cap and t % 8 == 0]
    if m_cap <= 1024 and m_cap not in tm_opts:
        tm_opts.append(m_cap)
    tm_opts = sorted(set(tm_opts), reverse=True)
    if not tm_opts:
        tm_opts = [m_cap]
    ti_opts = _inner_tile_candidates(inner_eff)

    chosen = None
    # 1) Prefer full weight residency (ti == inner): weights DMA'd exactly once
    #    over the whole grid, no accumulator path.
    for tm in tm_opts:
        if tm < min(256, m_cap):
            break
        if _vmem_estimate(tm, inner_eff, D, dout_p, isz_x, isz_w, isz_out,
                          True) <= budget:
            chosen = (tm, inner_eff)
            break
    # 2) Otherwise: largest row tile, then largest inner slab, that fits budget.
    if chosen is None:
        for tm in tm_opts:
            for ti in ti_opts:
                if _vmem_estimate(tm, ti, D, dout_p, isz_x, isz_w, isz_out,
                                  ti == inner_eff) <= budget:
                    chosen = (tm, ti)
                    break
            if chosen is not None:
                break
    if chosen is None:
        chosen = (tm_opts[-1], ti_opts[-1])
    tm, ti = chosen
    single_step = (ti == inner_eff)

    # Rows: flatten and pad only when actually needed (no casted copy of x;
    # the cast to compute_dtype happens inside the kernel).
    Mpad = _round_up(M, tm)
    x2 = x.reshape(M, D)
    if Mpad != M:
        x2 = jnp.pad(x2, ((0, Mpad - M), (0, 0)))

    n_row = Mpad // tm
    n_inner = inner_eff // ti
    gate_off = n_inner if not split else 0

    # ------------------------------------------------------------ cost / hints
    flops = 2 * M * D * (2 * inner) + 2 * M * inner * Dout
    weight_bytes = ((D * 2 * inner_eff + inner_eff * dout_p) * isz_w
                    + (2 * inner_eff + dout_p) * 4)
    weight_passes = 1 if single_step else n_row   # re-streamed per row tile
    bytes_accessed = (M * D * isz_x
                      + weight_passes * weight_bytes
                      + M * dout_p * isz_out)

    kernel = functools.partial(
        _ff_glu_kernel_single if single_step else _ff_glu_kernel_tiled, cdt=cdt)
    scratch = [] if single_step else [pltpu.VMEM((tm, dout_p), jnp.float32)]

    out2 = pl.pallas_call(
        kernel,
        out_shape=jax.ShapeDtypeStruct((Mpad, dout_p), out_dtype),
        grid_spec=pltpu.PrefetchScalarGridSpec(
            num_scalar_prefetch=0,
            grid=(n_row, n_inner),
            in_specs=[
                pl.BlockSpec((tm, D), lambda i, j: (i, 0)),              # x rows
                pl.BlockSpec((D, ti), lambda i, j: (0, j)),              # W1 value
                pl.BlockSpec((D, ti), lambda i, j: (0, j + gate_off)),   # W1 gate
                pl.BlockSpec((1, ti), lambda i, j: (0, j)),              # b1 value
                pl.BlockSpec((1, ti), lambda i, j: (0, j + gate_off)),   # b1 gate
                pl.BlockSpec((ti, dout_p), lambda i, j: (j, 0)),         # W2 rows
                pl.BlockSpec((1, dout_p), lambda i, j: (0, 0)),          # b2
            ],
            out_specs=pl.BlockSpec((tm, dout_p), lambda i, j: (i, 0)),
            scratch_shapes=scratch,
        ),
        compiler_params=pltpu.CompilerParams(
            dimension_semantics=("parallel", "arbitrary"),
            vmem_limit_bytes=int(budget),
        ),
        cost_estimate=pl.CostEstimate(
            flops=int(flops),
            transcendentals=int(M * inner),
            bytes_accessed=int(bytes_accessed),
        ),
    )(x2, w1a, w1b, b1a, b1b, w2c, b2_2d)

    return out2[:M, :Dout].reshape(B, N, Dout)


def _reference(x, w1, b1, w2, b2):
    h = jnp.einsum("bnd,de->bne", x, w1) + b1
    inner = w2.shape[0]
    a, g = h[..., :inner], h[..., inner:]
    y = a * (g * jax.nn.sigmoid(g))
    return jnp.einsum("bni,io->bno", y, w2) + b2


if __name__ == "__main__":
    # Small shapes consistent with the module: dim=32, mult=4 -> inner=128.
    B, N, dim, mult = 2, 8, 32, 4
    inner = dim * mult
    dim_out = dim

    key = jax.random.PRNGKey(0)
    kx, k1, kb1, k2, kb2 = jax.random.split(key, 5)

    x = jax.random.normal(kx, (B, N, dim), dtype=jnp.float32)
    # PyTorch Linear weight (out,in) stored transposed here as (in,out).
    # Note: the module's zero_init_output=True default would zero w2/b2; random
    # values are used so the kernel is exercised non-trivially.
    w1 = jax.random.normal(k1, (dim, 2 * inner), dtype=jnp.float32) * 0.05
    b1 = jax.random.normal(kb1, (2 * inner,), dtype=jnp.float32) * 0.05
    w2 = jax.random.normal(k2, (inner, dim_out), dtype=jnp.float32) * 0.05
    b2 = jax.random.normal(kb2, (dim_out,), dtype=jnp.float32) * 0.05

    ref = _reference(x, w1, b1, w2, b2)

    # f32 MXU operands (tight tolerance).
    out_f32 = jax.block_until_ready(
        feedforward_glu(x, w1, b1, w2, b2, compute_dtype=jnp.float32))
    assert out_f32.shape == (B, N, dim_out)
    assert jnp.allclose(out_f32, ref, atol=1e-4, rtol=1e-4), "f32 mismatch"

    # Default bf16 MXU operands with f32 accumulation/gating; pre-cast weights
    # exercise the zero-copy weight path (loose tolerance vs. f32 reference).
    out_bf16 = jax.block_until_ready(
        feedforward_glu(x, w1.astype(jnp.bfloat16), b1,
                        w2.astype(jnp.bfloat16), b2))
    assert jnp.allclose(out_bf16, ref, atol=5e-2, rtol=5e-2), "bf16 mismatch"

    # Ragged row count (B*N not a multiple of the tile) exercises row padding.
    Nr = 9
    xr = jax.random.normal(kx, (B, Nr, dim), dtype=jnp.float32)
    out_r = jax.block_until_ready(
        feedforward_glu(xr, w1, b1, w2, b2, compute_dtype=jnp.float32))
    assert jnp.allclose(out_r, _reference(xr, w1, b1, w2, b2),
                        atol=1e-4, rtol=1e-4), "ragged mismatch"

    print("KERNEL_OK")
</pallas_src>

<mosaic_0001>
module attributes {stable_mosaic.version = 11 : i64} {
  func.func @_ff_glu_kernel_single(%arg0: i32, %arg1: i32, %arg2: memref<16x32xf32, #tpu.memory_space<vmem>>, %arg3: memref<32x128xf32, #tpu.memory_space<vmem>>, %arg4: memref<32x128xf32, #tpu.memory_space<vmem>>, %arg5: memref<1x128xf32, #tpu.memory_space<vmem>>, %arg6: memref<1x128xf32, #tpu.memory_space<vmem>>, %arg7: memref<128x128xf32, #tpu.memory_space<vmem>>, %arg8: memref<1x128xf32, #tpu.memory_space<vmem>>, %arg9: memref<16x128xf32, #tpu.memory_space<vmem>>) attributes {dimension_semantics = [#tpu.dimension_semantics<parallel>, #tpu.dimension_semantics<arbitrary>], iteration_bounds = array<i64: 1, 1>, scalar_prefetch = 0 : i64, scratch_operands = 0 : i64, tpu.core_type = #tpu.core_type<tc>, window_params = [{transform_indices = @transform_0, window_bounds = array<i64: 16, 32>}, {transform_indices = @transform_1, window_bounds = array<i64: 32, 128>}, {transform_indices = @transform_2, window_bounds = array<i64: 32, 128>}, {transform_indices = @transform_3, window_bounds = array<i64: 1, 128>}, {transform_indices = @transform_4, window_bounds = array<i64: 1, 128>}, {transform_indices = @transform_5, window_bounds = array<i64: 128, 128>}, {pipeline_mode = #tpu.pipeline_mode<synchronous>, transform_indices = @transform_6, window_bounds = array<i64: 1, 128>}, {transform_indices = @transform_7, window_bounds = array<i64: 16, 128>}]} {
    %c0 = arith.constant 0 : index
    %c0_0 = arith.constant 0 : index
    %0 = vector.load %arg2[%c0, %c0_0] : memref<16x32xf32, #tpu.memory_space<vmem>>, vector<16x32xf32>
    %c0_1 = arith.constant 0 : index
    %c0_2 = arith.constant 0 : index
    %1 = vector.load %arg3[%c0_1, %c0_2] : memref<32x128xf32, #tpu.memory_space<vmem>>, vector<32x128xf32>
    %cst = arith.constant dense<0.000000e+00> : vector<16x128xf32>
    %2 = tpu.matmul %0, %1, %cst {dimension_numbers = #tpu.dot_dimension_numbers<[1], [0], [0], [1], [0, 0, 1, 1], [], []>} : vector<16x32xf32>, vector<32x128xf32>, vector<16x128xf32> -> vector<16x128xf32>
    %c0_3 = arith.constant 0 : index
    %c0_4 = arith.constant 0 : index
    %3 = vector.load %arg5[%c0_3, %c0_4] : memref<1x128xf32, #tpu.memory_space<vmem>>, vector<1x128xf32>
    %4 = vector.broadcast %3 : vector<1x128xf32> to vector<16x128xf32>
    %5 = arith.addf %2, %4 : vector<16x128xf32>
    %c0_5 = arith.constant 0 : index
    %c0_6 = arith.constant 0 : index
    %6 = vector.load %arg4[%c0_5, %c0_6] : memref<32x128xf32, #tpu.memory_space<vmem>>, vector<32x128xf32>
    %cst_7 = arith.constant dense<0.000000e+00> : vector<16x128xf32>
    %7 = tpu.matmul %0, %6, %cst_7 {dimension_numbers = #tpu.dot_dimension_numbers<[1], [0], [0], [1], [0, 0, 1, 1], [], []>} : vector<16x32xf32>, vector<32x128xf32>, vector<16x128xf32> -> vector<16x128xf32>
    %c0_8 = arith.constant 0 : index
    %c0_9 = arith.constant 0 : index
    %8 = vector.load %arg6[%c0_8, %c0_9] : memref<1x128xf32, #tpu.memory_space<vmem>>, vector<1x128xf32>
    %9 = vector.broadcast %8 : vector<1x128xf32> to vector<16x128xf32>
    %10 = arith.addf %7, %9 : vector<16x128xf32>
    %11 = arith.negf %10 : vector<16x128xf32>
    %12 = math.exp %11 : vector<16x128xf32>
    %cst_10 = arith.constant 1.000000e+00 : f32
    %13 = vector.broadcast %cst_10 : f32 to vector<16x128xf32>
    %14 = arith.addf %13, %12 : vector<16x128xf32>
    %15 = arith.divf %13, %14 : vector<16x128xf32>
    %16 = arith.mulf %10, %15 : vector<16x128xf32>
    %17 = arith.mulf %5, %16 : vector<16x128xf32>
    %c0_11 = arith.constant 0 : index
    %c0_12 = arith.constant 0 : index
    %18 = vector.load %arg7[%c0_11, %c0_12] : memref<128x128xf32, #tpu.memory_space<vmem>>, vector<128x128xf32>
    %cst_13 = arith.constant dense<0.000000e+00> : vector<16x128xf32>
    %19 = tpu.matmul %17, %18, %cst_13 {dimension_numbers = #tpu.dot_dimension_numbers<[1], [0], [0], [1], [0, 0, 1, 1], [], []>} : vector<16x128xf32>, vector<128x128xf32>, vector<16x128xf32> -> vector<16x128xf32>
    %c0_14 = arith.constant 0 : index
    %c0_15 = arith.constant 0 : index
    %20 = vector.load %arg8[%c0_14, %c0_15] : memref<1x128xf32, #tpu.memory_space<vmem>>, vector<1x128xf32>
    %21 = vector.broadcast %20 : vector<1x128xf32> to vector<16x128xf32>
    %22 = arith.addf %19, %21 : vector<16x128xf32>
    %c0_16 = arith.constant 0 : index
    %c0_17 = arith.constant 0 : index
    %23 = vector.load %arg9[%c0_16, %c0_17] : memref<16x128xf32, #tpu.memory_space<vmem>>, vector<16x128xf32>
    tpu.vector_store %arg9[%c0_16, %c0_17], %22 {strides = array<i32>} : memref<16x128xf32, #tpu.memory_space<vmem>>, vector<16x128xf32>,
    return
  }
  func.func @transform_0(%arg0: i32, %arg1: i32) -> (i32, i32) {
    %c0_i32 = arith.constant 0 : i32
    %c0_i32_0 = arith.constant 0 : i32
    return %arg0, %c0_i32 : i32, i32
  }
  func.func @transform_1(%arg0: i32, %arg1: i32) -> (i32, i32) {
    %c0_i32 = arith.constant 0 : i32
    %c0_i32_0 = arith.constant 0 : i32
    return %c0_i32, %arg1 : i32, i32
  }
  func.func @transform_2(%arg0: i32, %arg1: i32) -> (i32, i32) {
    %c1_i32 = arith.constant 1 : i32
    %0 = arith.addi %arg1, %c1_i32 : i32
    %c0_i32 = arith.constant 0 : i32
    %c0_i32_0 = arith.constant 0 : i32
    return %c0_i32, %0 : i32, i32
  }
  func.func @transform_3(%arg0: i32, %arg1: i32) -> (i32, i32) {
    %c0_i32 = arith.constant 0 : i32
    %c0_i32_0 = arith.constant 0 : i32
    return %c0_i32, %arg1 : i32, i32
  }
  func.func @transform_4(%arg0: i32, %arg1: i32) -> (i32, i32) {
    %c1_i32 = arith.constant 1 : i32
    %0 = arith.addi %arg1, %c1_i32 : i32
    %c0_i32 = arith.constant 0 : i32
    %c0_i32_0 = arith.constant 0 : i32
    return %c0_i32, %0 : i32, i32
  }
  func.func @transform_5(%arg0: i32, %arg1: i32) -> (i32, i32) {
    %c0_i32 = arith.constant 0 : i32
    %c0_i32_0 = arith.constant 0 : i32
    return %arg1, %c0_i32 : i32, i32
  }
  func.func @transform_6(%arg0: i32, %arg1: i32) -> (i32, i32) {
    %c0_i32 = arith.constant 0 : i32
    %c0_i32_0 = arith.constant 0 : i32
    %c0_i32_1 = arith.constant 0 : i32
    return %c0_i32, %c0_i32_0 : i32, i32
  }
  func.func @transform_7(%arg0: i32, %arg1: i32) -> (i32, i32) {
    %c0_i32 = arith.constant 0 : i32
    %c0_i32_0 = arith.constant 0 : i32
    return %arg0, %c0_i32 : i32, i32
  }
}

</mosaic_0001>

<bundles_post_ra>
// kernel: tpu_custom_call.1
= control target key start
LH: loop header
LB: loop body
LE: loop exit
PB: predicated region body
PF: predicated region fallthrough
CT: control target
= control target key end

     0   :  { %12 = vsyncpa [#allocation3], 0  ;;  %s735_s0 = inlined_call_operand.hbm [shape: f32[16,32], index: 0, kind: input, shape index: {}]   ;;  %s736_s1 = inlined_call_operand.hbm [shape: f32[32,256], index: 1, kind: input, shape index: {}]   ;;  %s737_s2 = inlined_call_operand.hbm [shape: f32[32,256], index: 2, kind: input, shape index: {}]   ;;  %s738_s3 = inlined_call_operand.vmem [shape: f32[1,256], index: 3, kind: input, shape index: {}]   ;;  %s739_s4 = inlined_call_operand.vmem [shape: f32[1,256], index: 4, kind: input, shape index: {}]   ;;  %s740_s5 = inlined_call_operand.hbm [shape: f32[128,128], index: 5, kind: input, shape index: {}]   ;;  %s741_s6 = inlined_call_operand.vmem [shape: f32[1,128], index: 6, kind: input, shape index: {}]   ;;  %s742_s7 = inlined_call_operand.hbm [shape: f32[16,128], index: 7, kind: output, shape index: {}]  }
   0x1   :  { %13 = vsyncpa [#allocation6], 0 }
   0x2   :  { %14 = vsyncpa [#allocation9], 0 }
   0x3   :  { %15 = vsyncpa [#allocation4], 0  ;;  %s644_s24 = smov [#allocation5]   ;;  %s645_s26 = smov [#allocation2]  }
   0x4   :  { %s33_s25 = sshll.u32 %s644_s24, 4  ;;  %s21_s27 = sshll.u32 %s645_s26, 4  ;;  %s34_s25 = int_to_ptr.vmem [resolvable:$true] %s33_s25  ;;  %s22_s27 = int_to_ptr.vmem [resolvable:$true] %s21_s27 }
   0x5   :  { %s541_s28 = scalar_lea.vmem %s34_s25, 512  ;;  %p546_p1 = scmp.lt.s32.totalorder %s34_s25, %s34_s25 }
   0x6   :  { %p542_p0 = scmp.ne.s32.totalorder %s34_s25, %s541_s28  ;;  %p547_p2 = scmp.lt.s32.totalorder %s541_s28, %s541_s28 }
   0x8   :  { %p548_p3 = por %p547_p2, %p546_p1 }
   0xa   :  { %p549_p4 = pnand %p548_p3, %p542_p0 }
   0xc   :  { %552 = shalt.err (!%p549_p4)
}
   0xd   :  { %s646_s29 = smov 256   ;;  %s647_s30 = smov 128  }
   0xe   :  { %s648_s8 = smov 8   ;;  %s416_s13 = scalar_lea.hbm %s737_s2, 128 }
   0xf   :  { %39 = dma.hbm_to_vmem [thread:$0]  %s736_s1, 512, %s34_s25, [#allocation6], %s646_s29, %s647_s30, %s648_s8  }
  0x10   :  { %s561_s14 = scalar_lea.vmem %s22_s27, 256  ;;  %p566_p6 = scmp.lt.s32.totalorder %s22_s27, %s22_s27 }
  0x11   :  { %p562_p5 = scmp.ne.s32.totalorder %s22_s27, %s561_s14  ;;  %p567_p7 = scmp.lt.s32.totalorder %s561_s14, %s561_s14 }
  0x13   :  { %p568_p8 = por %p567_p7, %p566_p6 }
  0x15   :  { %p569_p9 = pnand %p568_p8, %p562_p5 }
  0x17   :  { %572 = shalt.err (!%p569_p9)
}
  0x18   :  { %27 = dma.hbm_to_vmem [thread:$0]  %s735_s0, 256, %s22_s27, [#allocation3], %s647_s30, %s647_s30, %s648_s8  }
  0x19   :  { %s649_s1 = smov [#allocation7]   ;;  %s650_s18 = smov [#allocation8]  }
  0x1a   :  { %s48_s17 = sshll.u32 %s649_s1, 4  ;;  %s69_s19 = sshll.u32 %s650_s18, 4  ;;  %s49_s17 = int_to_ptr.vmem [resolvable:$true] %s48_s17  ;;  %s70_s19 = int_to_ptr.vmem [resolvable:$true] %s69_s19 }
  0x1b   :  { %s583_s2 = scalar_lea.vmem %s49_s17, 512  ;;  %p588_p11 = scmp.lt.s32.totalorder %s49_s17, %s49_s17 }
  0x1c   :  { %p584_p10 = scmp.ne.s32.totalorder %s49_s17, %s583_s2  ;;  %p589_p12 = scmp.lt.s32.totalorder %s583_s2, %s583_s2 }
  0x1e   :  { %p590_p13 = por %p589_p12, %p588_p11 }
  0x20   :  { %p591_p0 = pnand %p590_p13, %p584_p10 }
  0x22   :  { %594 = shalt.err (!%p591_p0)
}
  0x23   :  { %54 = dma.hbm_to_vmem [thread:$0]  %s416_s13, 512, %s49_s17, [#allocation6], %s646_s29, %s647_s30, %s648_s8  }
  0x24   :  { %s604_s20 = scalar_lea.vmem %s70_s19, 2048  ;;  %p609_p2 = scmp.lt.s32.totalorder %s70_s19, %s70_s19 }
  0x25   :  { %p605_p1 = scmp.ne.s32.totalorder %s70_s19, %s604_s20  ;;  %p610_p3 = scmp.lt.s32.totalorder %s604_s20, %s604_s20 }
  0x27   :  { %p611_p4 = por %p610_p3, %p609_p2 }
  0x29   :  { %p612_p5 = pnand %p611_p4, %p605_p1 }
  0x2b   :  { %615 = shalt.err (!%p612_p5)
}
  0x2c   :  { %75 = dma.hbm_to_vmem [thread:$0]  %s740_s5, 2048, %s70_s19, [#allocation9], %s647_s30, %s647_s30, %s648_s8  }
  0x2d   :  { %636 = dma.done.wait [#allocation3], 256  }
  0x2e   :  { %637 = vsyncadd [#allocation3], 4294967040 }
  0x2f   :  { %638 = dma.done.wait [#allocation6], 1024  }
  0x30   :  { %639 = vsyncadd [#allocation6], 4294966272 }
  0x31   :  { %640 = dma.done.wait [#allocation9], 2048  }
  0x32   :  { %641 = vsyncadd [#allocation9], 4294965248  ;;  %vm113_vm0 = vcmask 261120   ;;  %v105_v0 = vld [vmem:[#allocation5 + $0x18] sm:$0xff]  ;;  %v104_v1 = vld [vmem:[#allocation5 + $0x10] sm:$0xff]  ;;  %s651_s26 = smov [#allocation10]  }
  0x33   :  { %460 = vmatprep.subr.mxu1 %v105_v0  ;;  %v100_v2 = vld [vmem:[#allocation2] sm:$0xff]  ;;  %v103_v3 = vld [vmem:[#allocation5 + $0x8] sm:$0xff]  ;;  %v102_v4 = vld [vmem:[#allocation5] sm:$0xff]  ;;  %s402_s27 = sshll.u32 %s651_s26, 4  ;;  %s403_s27 = int_to_ptr.vmem [resolvable:$true] %s402_s27 }
  0x34   :  { %461 = vmatpush3.msra.mxu1 %v105_v0  ;;  %468 = vmatprep.mubr.msk.f32.mxu1 %vm113_vm0, %v100_v2  ;;  %v101_v5 = vld [vmem:[#allocation2 + $0x8] sm:$0xff]  ;;  %v197_v7 = vld [vmem:[#allocation7 + $0x10] sm:$0xff]  ;;  %v196_v8 = vld [vmem:[#allocation7 + $0x8] sm:$0xff]  ;;  %p621_p7 = scmp.lt.s32.totalorder %s403_s27, %s403_s27 }
  0x35   :  { %462 = vmatprep.subr.mxu1 %v104_v1  ;;  %v198_v6 = vld [vmem:[#allocation7 + $0x18] sm:$0xff]  ;;  %v195_v9 = vld [vmem:[#allocation7] sm:$0xff]  ;;  %v311_v11 = vld [vmem:[#allocation8 + $0x70] sm:$0xff] }
  0x36   :  { %463 = vmatpush3.msra.mxu1 %v104_v1  ;;  %v312_v10 = vld [vmem:[#allocation8 + $0x78] sm:$0xff]  ;;  %v310_v12 = vld [vmem:[#allocation8 + $0x68] sm:$0xff]  ;;  %v309_v13 = vld [vmem:[#allocation8 + $0x60] sm:$0xff] }
  0x37   :  { %464 = vmatprep.subr.mxu1 %v103_v3  ;;  %482 = vmatprep.subr.mxu0 %v312_v10  ;;  %v308_v14 = vld [vmem:[#allocation8 + $0x58] sm:$0xff]  ;;  %v307_v15 = vld [vmem:[#allocation8 + $0x50] sm:$0xff]  ;;  %v306_v16 = vld [vmem:[#allocation8 + $0x48] sm:$0xff] }
  0x38   :  { %465 = vmatpush3.msra.mxu1 %v103_v3  ;;  %483 = vmatpush3.msra.mxu0 %v312_v10  ;;  %v305_v17 = vld [vmem:[#allocation8 + $0x40] sm:$0xff]  ;;  %v304_v18 = vld [vmem:[#allocation8 + $0x38] sm:$0xff]  ;;  %v303_v19 = vld [vmem:[#allocation8 + $0x30] sm:$0xff] }
  0x39   :  { %466 = vmatprep.subr.mxu1 %v102_v4  ;;  %484 = vmatprep.subr.mxu0 %v311_v11  ;;  %v302_v20 = vld [vmem:[#allocation8 + $0x28] sm:$0xff]  ;;  %v301_v21 = vld [vmem:[#allocation8 + $0x20] sm:$0xff]  ;;  %v300_v22 = vld [vmem:[#allocation8 + $0x18] sm:$0xff] }
  0x3a   :  { %467 = vmatpush3.msra.mxu1 %v102_v4  ;;  %485 = vmatpush3.msra.mxu0 %v311_v11  ;;  %v299_v23 = vld [vmem:[#allocation8 + $0x10] sm:$0xff]  ;;  %v298_v24 = vld [vmem:[#allocation8 + $0x8] sm:$0xff]  ;;  %v297_v25 = vld [vmem:[#allocation8] sm:$0xff] }
  0x3b   :  { %469 = vmatmul.mubr.msk.f32.vlgmr.msra.gmra.mxu1 %vm113_vm0, %v101_v5  ;;  %471 = vmatprep.subr.mxu1 %v198_v6  ;;  %v424_v28 = vld [vmem:[%s739_s4 + $0x1] ss:$0 sm:$0xff]  ;;  %v420_v40 = vld [vmem:[%s738_s3] ss:$0 sm:$0xff]  ;;  %s616_s3 = scalar_lea.vmem %s403_s27, 256 }
  0x3c   :  { %472 = vmatpush3.msra.mxu1 %v198_v6  ;;  %479 = vmatprep.mubr.msk.f32.mxu1 %vm113_vm0, %v100_v2  ;;  %v429_v48 = vld [vmem:[%s741_s6] ss:$0 sm:$0xff]  ;;  %p617_p6 = scmp.ne.s32.totalorder %s403_s27, %s616_s3  ;;  %p622_p8 = scmp.lt.s32.totalorder %s616_s3, %s616_s3 }
  0x3d   :  { %473 = vmatprep.subr.mxu1 %v197_v7  ;;  %486 = vmatprep.subr.mxu0 %v310_v12 }
  0x3e   :  { %474 = vmatpush3.msra.mxu1 %v197_v7  ;;  %487 = vmatpush3.msra.mxu0 %v310_v12  ;;  %p623_p9 = por %p622_p8, %p621_p7 }
  0x3f   :  { %475 = vmatprep.subr.mxu1 %v196_v8  ;;  %488 = vmatprep.subr.mxu0 %v309_v13 }
  0x40   :  { %476 = vmatpush3.msra.mxu1 %v196_v8  ;;  %489 = vmatpush3.msra.mxu0 %v309_v13  ;;  %p624_p10 = pnand %p623_p9, %p617_p6 }
  0x41   :  { %477 = vmatprep.subr.mxu1 %v195_v9  ;;  %490 = vmatprep.subr.mxu0 %v308_v14 }
  0x42   :  { %478 = vmatpush3.msra.mxu1 %v195_v9  ;;  %491 = vmatpush3.msra.mxu0 %v308_v14 }
  0x43   :  { %480 = vmatmul.mubr.msk.f32.vlgmr.msra.gmra.mxu1 %vm113_vm0, %v101_v5  ;;  %492 = vmatprep.subr.mxu0 %v307_v15 }
  0x44   :  { %493 = vmatpush3.msra.mxu0 %v307_v15 }
  0x45   :  { %494 = vmatprep.subr.mxu0 %v306_v16 }
  0x46   :  { %495 = vmatpush3.msra.mxu0 %v306_v16 }
  0x47   :  { %496 = vmatprep.subr.mxu0 %v305_v17 }
  0x48   :  { %497 = vmatpush3.msra.mxu0 %v305_v17 }
  0x49   :  { %498 = vmatprep.subr.mxu0 %v304_v18 }
  0x4a   :  { %499 = vmatpush3.msra.mxu0 %v304_v18 }
  0x4b   :  { %500 = vmatprep.subr.mxu0 %v303_v19 }
  0x4c   :  { %501 = vmatpush3.msra.mxu0 %v303_v19 }
  0x4d   :  { %502 = vmatprep.subr.mxu0 %v302_v20 }
  0x4e   :  { %503 = vmatpush3.msra.mxu0 %v302_v20 }
  0x4f   :  { %504 = vmatprep.subr.mxu0 %v301_v21 }
  0x50   :  { %505 = vmatpush3.msra.mxu0 %v301_v21 }
  0x51   :  { %506 = vmatprep.subr.mxu0 %v300_v22 }
  0x52   :  { %507 = vmatpush3.msra.mxu0 %v300_v22 }
  0x53   :  { %508 = vmatprep.subr.mxu0 %v299_v23 }
  0x54   :  { %509 = vmatpush3.msra.mxu0 %v299_v23 }
  0x55   :  { %510 = vmatprep.subr.mxu0 %v298_v24 }
  0x56   :  { %511 = vmatpush3.msra.mxu0 %v298_v24 }
  0x57   :  { %512 = vmatprep.subr.mxu0 %v297_v25 }
  0x58   :  { %513 = vmatpush3.msra.mxu0 %v297_v25 }
  0xfb   :  { %v470_v26 = vpop.f32.mrf.mxu1 }
  0xfc   :  { %v192_v45 = vadd.f32 %v470_v26, %v420_v40 }
  0xfd   :  { %v186_v27 = vpop.f32.mrf.mxu1 }
  0xfe   :  { %v187_v43 = vadd.f32 %v420_v40, %v186_v27 }
 0x103   :  { %v481_v29 = vpop.f32.mrf.mxu1 }
 0x104   :  { %v278_v30 = vadd.f32 %v481_v29, %v424_v28 }
 0x105   :  { %v272_v31 = vpop.f32.mrf.mxu1 }
 0x106   :  { %v428_v32 = vmul.f32 -1.442695, %v278_v30  ;;  %v273_v33 = vadd.f32 %v424_v28, %v272_v31 }
 0x108   :  { %525 = vpow2.f32 %v428_v32  ;;  %v427_v34 = vmul.f32 -1.442695, %v273_v33 }
 0x10a   :  { %527 = vpow2.f32 %v427_v34 }
 0x115   :  { %v526_v35 = vpop.eup %525 }
 0x116   :  { %v288_v36 = vadd.f32 1.0, %v526_v35 }
 0x117   :  { %v528_v37 = vpop.eup %527 }
 0x118   :  { %529 = vrcp.f32 %v288_v36  ;;  %v287_v38 = vadd.f32 1.0, %v528_v37 }
 0x11a   :  { %531 = vrcp.f32 %v287_v38 }
 0x125   :  { %v530_v39 = vpop.eup %529 }
 0x126   :  { %v294_v42 = vmul.f32 %v530_v39, %v278_v30 }
 0x127   :  { %v532_v41 = vpop.eup %531 }
 0x128   :  { %v293_v44 = vmul.f32 %v532_v41, %v273_v33  ;;  %v296_v47 = vmul.f32 %v294_v42, %v192_v45 }
 0x12a   :  { %v295_v46 = vmul.f32 %v293_v44, %v187_v43 }
 0x12c   :  { %514 = vmatprep.mubr.f32.mxu0 %v295_v46 }
 0x12d   :  { %515 = vmatmul.mubr.f32.vlgmr.msra.gmra.mxu0 %v296_v47 }
 0x1ed   :  { %v516_v49 = vpop.f32.mrf.mxu0 }
 0x1ee   :  { %v392_v50 = vadd.f32 %v516_v49, %v429_v48 }
 0x1ef   :  { %v386_v51 = vpop.f32.mrf.mxu0 }
 0x1f0   :  { %396 = vst [vmem:[#allocation10 + $0x8] sm:$0xff] %v392_v50  ;;  %v387_v52 = vadd.f32 %v429_v48, %v386_v51 }
 0x1f2   :  { %395 = vst [vmem:[#allocation10] sm:$0xff] %v387_v52 }
 0x1f3   :  { %627 = shalt.err (!%p624_p10)
}
 0x1f4   :  { %408 = dma.vmem_to_hbm [thread:$0]  %s403_s27, 256, %s742_s7, [#allocation4], %s647_s30, %s647_s30, %s648_s8  }
 0x1f5   :  { %642 = dma.done.wait [#allocation4], 256  }
 0x1f6   :  { %643 = vsyncadd [#allocation4], 4294967040 }
 0x1f7   :  { %412 = vsyncpa [#allocation3], 1 }
 0x1f8   :  { %413 = vsyncpa [#allocation6], 1 }
 0x1f9   :  { %414 = vsyncpa [#allocation9], 1 }
 0x1fa   :  { %415 = vsyncpa [#allocation4], 1 }

</bundles_post_ra>
